<compile_context>
chip_gen: v7x
topology: tpu7x:2x2x1
jax: 0.10.0
libtpu: 0.0.40
codegen_flags: <defaults>
</compile_context>

<pallas_src>
import jax
import jax.numpy as jnp
from jax.experimental import pallas as pl
from jax.experimental.pallas import tpu as pltpu

HIDDEN = 128
SUBLANE = 16          # bf16 packs two rows per sublane -> 16-row min tile
LANE = 128
VMEM_TILE_BUDGET = 20 * 1024 * 1024   # keep resident weights + x double-buffer under this


def _round_up(n, m):
    return ((n + m - 1) // m) * m


def _disc_kernel(x_ref, w1_ref, b1_ref, w2_ref, b2_ref, o_ref):
    # x: (TB, Dp) bf16, w1: (Dp, 128) bf16, b1/w2: (1, 128) f32, b2: (1,) SMEM f32.
    # Linear 1 on the MXU (bf16 inputs, f32 accumulation) + bias.
    h = jnp.dot(x_ref[...], w1_ref[...],
                preferred_element_type=jnp.float32) + b1_ref[...]
    # LeakyReLU(negative_slope=0.01) on the VPU.
    h = jnp.where(h > 0, h, 0.01 * h)

    # Linear 2 (128 -> 1): VPU multiply + XLU lane reduction (an N=1 MXU matmul
    # would waste 127/128 columns).  w2_ref is the (1, 128) weight row.
    logits = jnp.sum(h * w2_ref[...], axis=-1, keepdims=True) + b2_ref[0]

    # Numerically stable, *exact* sigmoid: exp argument is always <= 0, and the
    # divide is exact (the approx reciprocal previously broke the tolerance).
    pos = logits >= 0
    z = jnp.exp(jnp.where(pos, -logits, logits))
    o_ref[...] = (jnp.where(pos, 1.0, z) / (1.0 + z)).astype(o_ref.dtype)


def discriminator_forward(x, w1, b1, w2_row, b2, *, tb=512):
    """x: (B, img_dim) f32; w1: (D,128); b1: (1,128); w2_row: (1,128); b2: (1,).

    Returns (B, 1) f32 sigmoid probabilities.
    """
    B, D = x.shape

    # ---- feature (K) padding to a 128-lane multiple -------------------------
    Dp = _round_up(D, LANE)
    if Dp != D:
        x = jnp.pad(x, ((0, 0), (0, Dp - D)))
        w1 = jnp.pad(w1, ((0, Dp - D), (0, 0)))

    # ---- batch tile selection ------------------------------------------------
    # Multiple of 16 (bf16 sublane packing); guarantee >= 2 grid steps when the
    # batch allows (megacore sharding on v7x + pipelining); respect VMEM budget.
    half = _round_up(max(_round_up(B, SUBLANE) // 2, SUBLANE), SUBLANE)
    tb = max(SUBLANE, min(_round_up(tb, SUBLANE), half))
    w1_bytes = Dp * HIDDEN * 2
    tb_vmem = max(SUBLANE,
                  ((VMEM_TILE_BUDGET - w1_bytes) // (2 * Dp * 2) // SUBLANE) * SUBLANE)
    tb = min(tb, tb_vmem)

    Bp = _round_up(B, tb)
    if Bp != B:
        x = jnp.pad(x, ((0, Bp - B), (0, 0)))

    # ---- bf16 cast of the streamed/matmul operands (f32 accumulation kept) ---
    x_bf = x.astype(jnp.bfloat16)
    w1_bf = w1.astype(jnp.bfloat16)

    # ---- explicit VMEM limit (portable across 16/32 MiB scoped defaults) -----
    vmem_need = (2 * tb * Dp * 2          # double-buffered x tiles (bf16)
                 + Dp * HIDDEN * 2        # resident w1 (bf16)
                 + 4 * HIDDEN * 4         # b1, w2 rows (f32)
                 + 2 * tb * 4             # double-buffered output tiles
                 + tb * HIDDEN * 4)       # hidden activations
    vmem_limit = int(min(max(2 * vmem_need, 32 * 1024 * 1024), 64 * 1024 * 1024))

    out = pl.pallas_call(
        _disc_kernel,
        out_shape=jax.ShapeDtypeStruct((Bp, 1), jnp.float32),
        grid_spec=pltpu.PrefetchScalarGridSpec(
            num_scalar_prefetch=0,
            grid=(Bp // tb,),
            in_specs=[
                pl.BlockSpec((tb, Dp), lambda i: (i, 0)),            # x: streamed over batch
                pl.BlockSpec((Dp, HIDDEN), lambda i: (0, 0)),        # w1: resident
                pl.BlockSpec((1, HIDDEN), lambda i: (0, 0)),         # b1: resident
                pl.BlockSpec((1, HIDDEN), lambda i: (0, 0)),         # w2 row: resident
                pl.BlockSpec(memory_space=pltpu.MemorySpace.SMEM),   # b2 scalar
            ],
            out_specs=pl.BlockSpec((tb, 1), lambda i: (i, 0)),
        ),
        compiler_params=pltpu.CompilerParams(
            dimension_semantics=("parallel",),   # shard batch tiles across TCs on v7x
            vmem_limit_bytes=vmem_limit,
        ),
    )(x_bf, w1_bf, b1, w2_row, b2)
    return out[:B]


def init_params(key, img_dim):
    """Deterministic synthetic init (uniform, PyTorch-Linear-like bounds)."""
    k1, k2, k3, k4 = jax.random.split(key, 4)
    bound1 = 1.0 / jnp.sqrt(img_dim)
    bound2 = 1.0 / jnp.sqrt(HIDDEN)
    # w1 stored as (in, out) = PyTorch weight transposed; w2 as a (1, 128) row.
    w1 = jax.random.uniform(k1, (img_dim, HIDDEN), jnp.float32, -bound1, bound1)
    b1 = jax.random.uniform(k2, (1, HIDDEN), jnp.float32, -bound1, bound1)
    w2_row = jax.random.uniform(k3, (1, HIDDEN), jnp.float32, -bound2, bound2)
    b2 = jax.random.uniform(k4, (1,), jnp.float32, -bound2, bound2)
    return w1, b1, w2_row, b2


def reference_forward(x, w1, b1, w2_row, b2):
    h = x @ w1 + b1
    h = jnp.where(h > 0, h, 0.01 * h)
    return jax.nn.sigmoid(h @ w2_row.T + b2)


if __name__ == "__main__":
    # MNIST-like flattened images; B and D deliberately not tile/lane multiples
    # to exercise the batch and feature padding paths.
    B, IMG_DIM = 200, 784
    key = jax.random.PRNGKey(0)
    kx, kp = jax.random.split(key)
    x = jax.random.normal(kx, (B, IMG_DIM), jnp.float32)
    w1, b1, w2_row, b2 = init_params(kp, IMG_DIM)

    out = discriminator_forward(x, w1, b1, w2_row, b2)
    out = jax.block_until_ready(out)

    ref = reference_forward(x, w1, b1, w2_row, b2)
    assert out.shape == (B, 1), out.shape
    # bf16 layer-1 matmul (f32 accumulation) -> slightly looser than pure f32;
    # the sigmoid itself is now exact.
    assert jnp.allclose(out, ref, atol=5e-3, rtol=5e-3), "mismatch vs reference"

    print("KERNEL_OK")
</pallas_src>

<mosaic_0001>
module attributes {stable_mosaic.version = 11 : i64} {
  func.func @_disc_kernel(%arg0: i32, %arg1: memref<112x896xbf16, #tpu.memory_space<vmem>>, %arg2: memref<896x128xbf16, #tpu.memory_space<vmem>>, %arg3: memref<1x128xf32, #tpu.memory_space<vmem>>, %arg4: memref<1x128xf32, #tpu.memory_space<vmem>>, %arg5: memref<1xf32, #tpu.memory_space<smem>>, %arg6: memref<112x1xf32, #tpu.memory_space<vmem>>) attributes {dimension_semantics = [#tpu.dimension_semantics<parallel>], iteration_bounds = array<i64: 2>, scalar_prefetch = 0 : i64, scratch_operands = 0 : i64, tpu.core_type = #tpu.core_type<tc>, window_params = [{transform_indices = @transform_0, window_bounds = array<i64: 112, 896>}, {pipeline_mode = #tpu.pipeline_mode<synchronous>, transform_indices = @transform_1, window_bounds = array<i64: 896, 128>}, {pipeline_mode = #tpu.pipeline_mode<synchronous>, transform_indices = @transform_2, window_bounds = array<i64: 1, 128>}, {pipeline_mode = #tpu.pipeline_mode<synchronous>, transform_indices = @transform_3, window_bounds = array<i64: 1, 128>}, {transform_indices = @transform_4, window_bounds = array<i64: 1>}, {transform_indices = @transform_5, window_bounds = array<i64: 112, 1>}]} {
    %c0 = arith.constant 0 : index
    %c0_0 = arith.constant 0 : index
    %0 = vector.load %arg1[%c0, %c0_0] : memref<112x896xbf16, #tpu.memory_space<vmem>>, vector<112x896xbf16>
    %c0_1 = arith.constant 0 : index
    %c0_2 = arith.constant 0 : index
    %1 = vector.load %arg2[%c0_1, %c0_2] : memref<896x128xbf16, #tpu.memory_space<vmem>>, vector<896x128xbf16>
    %cst = arith.constant dense<0.000000e+00> : vector<112x128xf32>
    %2 = tpu.matmul %0, %1, %cst {dimension_numbers = #tpu.dot_dimension_numbers<[1], [0], [0], [1], [0, 0, 1, 1], [], []>} : vector<112x896xbf16>, vector<896x128xbf16>, vector<112x128xf32> -> vector<112x128xf32>
    %c0_3 = arith.constant 0 : index
    %c0_4 = arith.constant 0 : index
    %3 = vector.load %arg3[%c0_3, %c0_4] : memref<1x128xf32, #tpu.memory_space<vmem>>, vector<1x128xf32>
    %4 = vector.broadcast %3 : vector<1x128xf32> to vector<112x128xf32>
    %5 = arith.addf %2, %4 : vector<112x128xf32>
    %cst_5 = arith.constant 0.000000e+00 : f32
    %6 = vector.broadcast %cst_5 : f32 to vector<112x128xf32>
    %7 = arith.cmpf ogt, %5, %6 : vector<112x128xf32>
    %cst_6 = arith.constant 0.00999999977 : f32
    %8 = vector.broadcast %cst_6 : f32 to vector<112x128xf32>
    %9 = arith.mulf %8, %5 : vector<112x128xf32>
    %10 = arith.select %7, %5, %9 : vector<112x128xi1>, vector<112x128xf32>
    %c0_7 = arith.constant 0 : index
    %c0_8 = arith.constant 0 : index
    %11 = vector.load %arg4[%c0_7, %c0_8] : memref<1x128xf32, #tpu.memory_space<vmem>>, vector<1x128xf32>
    %12 = vector.broadcast %11 : vector<1x128xf32> to vector<112x128xf32>
    %13 = arith.mulf %10, %12 : vector<112x128xf32>
    %cst_9 = arith.constant dense<0.000000e+00> : vector<112xf32>
    %14 = vector.multi_reduction <add>, %13, %cst_9 [1] : vector<112x128xf32> to vector<112xf32>
    %15 = vector.shape_cast %14 : vector<112xf32> to vector<112x1xf32>
    %c0_10 = arith.constant 0 : index
    %16 = memref.load %arg5[%c0_10] : memref<1xf32, #tpu.memory_space<smem>>
    %17 = vector.broadcast %16 : f32 to vector<112x1xf32>
    %18 = arith.addf %15, %17 : vector<112x1xf32>
    %cst_11 = arith.constant 0.000000e+00 : f32
    %19 = vector.broadcast %cst_11 : f32 to vector<112x1xf32>
    %20 = arith.cmpf oge, %18, %19 : vector<112x1xf32>
    %cst_12 = arith.constant 0.000000e+00 : f32
    %21 = vector.broadcast %cst_12 : f32 to vector<112x1xf32>
    %22 = arith.subf %21, %18 : vector<112x1xf32>
    %23 = arith.select %20, %22, %18 : vector<112x1xi1>, vector<112x1xf32>
    %24 = math.exp %23 : vector<112x1xf32>
    %cst_13 = arith.constant 1.000000e+00 : f32
    %25 = vector.broadcast %cst_13 : f32 to vector<112x1xf32>
    %26 = arith.select %20, %25, %24 : vector<112x1xi1>, vector<112x1xf32>
    %cst_14 = arith.constant 1.000000e+00 : f32
    %27 = vector.broadcast %cst_14 : f32 to vector<112x1xf32>
    %28 = arith.addf %27, %24 : vector<112x1xf32>
    %29 = arith.divf %26, %28 : vector<112x1xf32>
    %c0_15 = arith.constant 0 : index
    %c0_16 = arith.constant 0 : index
    %30 = vector.load %arg6[%c0_15, %c0_16] : memref<112x1xf32, #tpu.memory_space<vmem>>, vector<112x1xf32>
    tpu.vector_store %arg6[%c0_15, %c0_16], %29 {strides = array<i32>} : memref<112x1xf32, #tpu.memory_space<vmem>>, vector<112x1xf32>,
    return
  }
  func.func @transform_0(%arg0: i32) -> (i32, i32) {
    %c0_i32 = arith.constant 0 : i32
    %c0_i32_0 = arith.constant 0 : i32
    return %arg0, %c0_i32 : i32, i32
  }
  func.func @transform_1(%arg0: i32) -> (i32, i32) {
    %c0_i32 = arith.constant 0 : i32
    %c0_i32_0 = arith.constant 0 : i32
    %c0_i32_1 = arith.constant 0 : i32
    return %c0_i32, %c0_i32_0 : i32, i32
  }
  func.func @transform_2(%arg0: i32) -> (i32, i32) {
    %c0_i32 = arith.constant 0 : i32
    %c0_i32_0 = arith.constant 0 : i32
    %c0_i32_1 = arith.constant 0 : i32
    return %c0_i32, %c0_i32_0 : i32, i32
  }
  func.func @transform_3(%arg0: i32) -> (i32, i32) {
    %c0_i32 = arith.constant 0 : i32
    %c0_i32_0 = arith.constant 0 : i32
    %c0_i32_1 = arith.constant 0 : i32
    return %c0_i32, %c0_i32_0 : i32, i32
  }
  func.func @transform_4(%arg0: i32) -> i32 {
    %c0_i32 = arith.constant 0 : i32
    %c0_i32_0 = arith.constant 0 : i32
    return %c0_i32 : i32
  }
  func.func @transform_5(%arg0: i32) -> (i32, i32) {
    %c0_i32 = arith.constant 0 : i32
    %c0_i32_0 = arith.constant 0 : i32
    return %arg0, %c0_i32 : i32, i32
  }
}

</mosaic_0001>

<bundles_post_ra>
// kernel: tpu_custom_call.1
= control target key start
LH: loop header
LB: loop body
LE: loop exit
PB: predicated region body
PF: predicated region fallthrough
CT: control target
= control target key end

     0   :  { %s2904_s0 = inlined_call_operand.hbm [shape: bf16[224,896], index: 0, kind: input, shape index: {}]   ;;  %s2905_s1 = inlined_call_operand.hbm [shape: bf16[896,128], index: 1, kind: input, shape index: {}]   ;;  %s2906_s2 = inlined_call_operand.vmem [shape: f32[1,128], index: 2, kind: input, shape index: {}]   ;;  %s2907_s3 = inlined_call_operand.vmem [shape: f32[1,128], index: 3, kind: input, shape index: {}]   ;;  %s2908_s4 = inlined_call_operand.<no memory space> [shape: f32[1], index: 4, kind: input, shape index: {}]   ;;  %s2909_s5 = inlined_call_operand.vmem [shape: f32[224,1], index: 5, kind: output, shape index: {}]  }
   0x1   :  { %10 = sst [smem:[#allocation2]] %s2908_s4 }
   0x2   :  { %11 = vsyncpa [#allocation4], 0 }
   0x3   :  { %13 = vsyncpa [#allocation4 + $0x1], 0 }
   0x4   :  { %14 = vsyncpa [#allocation6], 0  ;;  %s2441_s20 = smov 0   ;;  %s2443_s21 = smov 0  }
   0x5   :  { %s2445_s22 = smov 0   ;;  %s2447_s23 = smov 0  }
   0x6 LB: > { %s1709_s4 = sadd.s32 4294967295, %s2398_s23   ;;  %p40_p0 = scmp.ne.s32.totalorder %s2390_s21, %s2386_s20  ;;  %s2398_s23 = sphi %s2447_s23, %s2926_s23   ;;  %s2394_s22 = sphi %s2445_s22, %s2925_s22   ;;  %s2390_s21 = sphi %s2443_s21, %s2924_s21   ;;  %s2386_s20 = sphi %s2441_s20, %s2923_s20  }
   0x7   : > { %p2463_p1 = scmp.eq.s32.totalorder %s1709_s4, 0  ;;  %p1711_p2 = scmp.ge.s32.totalorder %s2398_s23, 1 }
   0x8   : > { %p161_p3 = scmp.lt.s32.totalorder %s2398_s23, 3  ;;  %s2400_s27 = smov [#allocation5]  }
   0x9   : > { %s2914_s24 = scalar_select %p2463_p1, 1, 0 }
   0xa   : > { %p2471_p4 = por %p2463_p1, %p40_p0  ;;  %p2475_p5 = pnand %p1711_p2, %p161_p3 }
   0xb   : > { %s173_s28 = sshll.u32 %s2400_s27, 4  ;;  %s2488_s30 = sadd.s32 1, %s2398_s23   ;;  %s174_s28 = int_to_ptr.vmem [resolvable:$true] %s173_s28 }
   0xc   : > { %s2915_s25 = scalar_select %p2471_p4, 1, 0 }
   0xd   : > { %s2916_s26 = scalar_select %p2475_p5, 1, 0 }
   0xe   : > { %p2069_p6 = pneg %p2475_p5  ;;  %s24_s6 = ssub.s32 %s2398_s23, %s2488_s30 }
   0xf   : > { %s2302_s9 = scalar_lea.hbm %s2905_s1, 7168 }
  0x10   : > { %p2483_p7 = pnand %p2069_p6, %p2463_p1  ;;  %p2303_p8 = scmp.ne.s32.totalorder %s2905_s1, %s2302_s9 }
  0x11   : > { %p2309_p12 = scmp.lt.u32.totalorder %s2302_s9, %s2905_s1 }
  0x12   : > { %p2304_p9 = pneg %p2483_p7 }
  0x14   : > { %p2305_p10 = pnand %p2304_p9, %p2303_p8 }
  0x16   : > { %p2306_p11 = pneg %p2305_p10 }
  0x18   : > { %p2311_p13 = pnand %p2309_p12, %p2306_p11 }
  0x1a   : > { %2314 = shalt.err (!%p2311_p13)
}
  0x1b   : > { %s2315_s14 = scalar_lea.vmem %s174_s28, 7168  ;;  %p2323_p6 = scmp.lt.s32.totalorder %s174_s28, %s174_s28 }
  0x1c   : > { %p2316_p0 = scmp.ne.s32.totalorder %s174_s28, %s2315_s14  ;;  %p2324_p1 = scmp.lt.s32.totalorder %s2315_s14, %s2315_s14 }
  0x1e   : > { %p2318_p2 = pnand %p2316_p0, %p2304_p9  ;;  %p2325_p4 = por %p2324_p1, %p2323_p6 }
  0x20   : > { %p2319_p3 = pneg %p2318_p2 }
  0x22   : > { %p2326_p5 = pnand %p2325_p4, %p2319_p3 }
  0x24   : > { %2329 = shalt.err (!%p2326_p5)
}
  0x25   : > { %s2401_s15 = smov 64   ;;  %s2402_s16 = smov 4  }
  0x26   : > { %2072 = dma.hbm_to_vmem [thread:$0]  (!%p2483_p7), %s2905_s1, 7168, %s174_s28, [#allocation6], %s2401_s15, %s2401_s15, %s2402_s16  }
  0x27   : > { %p25_p8 = scmp.eq.s32.totalorder %s24_s6, 0  ;;  %s27_s19 = sadd.s32 1, %s2394_s22 }
  0x28   : > { %p34_p1 = scmp.ne.s32.totalorder %s2394_s22, %s2390_s21  ;;  %p35_p4 = scmp.eq.s32.totalorder %s2398_s23, 0 }
  0x29   : > { %s2513_s20 = scalar_select %p25_p8, %s2394_s22, %s27_s19  }
  0x2a   : > { %p36_p5 = por %p35_p4, %p34_p1  ;;  %p2078_p9 = scmp.lt.s32.totalorder %s2398_s23, 2 }
  0x2b   : > { %s196_s27 = sand.u32 1, %s2394_s22   ;;  %s2079_s7 = smul.u32 6272, %s2398_s23 }
  0x2c   : > { %s2060_s8 = smul.u32 392, %s196_s27  ;;  %p2523_p7 = pnand %p2078_p9, %p36_p5 }
  0x2d   : > { %s2521_s11 = scalar_lea.hbm %s2904_s0, %s2079_s7  ;;  %s2529_s12 = scalar_lea.sflag [#allocation4], %s196_s27 }
  0x2e   : > { %s200_s29 = scalar_lea.vmem [#allocation3], %s2060_s8  ;;  %s2330_s13 = scalar_lea.hbm %s2521_s11, 6272 }
  0x2f   : > { %s208_s6 = sshll.u32 %s200_s29, 4  ;;  %p2331_p10 = scmp.ne.s32.totalorder %s2521_s11, %s2330_s13  ;;  %s2527_s6 = int_to_ptr.vmem [resolvable:$true] %s208_s6 }
  0x30   : > { %p2332_p11 = pneg %p2523_p7  ;;  %s2335_s16 = scalar_lea.hbm %s2904_s0, 12544 }
  0x31   : > { %p2336_p0 = scmp.lt.u32.totalorder %s2521_s11, %s2904_s0  ;;  %p2337_p2 = scmp.lt.u32.totalorder %s2335_s16, %s2330_s13 }
  0x32   : > { %p2333_p12 = pnand %p2332_p11, %p2331_p10  ;;  %p2339_p6 = scmp.lt.u32.totalorder %s2330_s13, %s2521_s11 }
  0x33   : > { %p2338_p3 = por %p2337_p2, %p2336_p0 }
  0x34   : > { %p2334_p13 = pneg %p2333_p12 }
  0x35   : > { %p2340_p8 = por %p2339_p6, %p2338_p3 }
  0x37   : > { %p2341_p1 = pnand %p2340_p8, %p2334_p13 }
  0x39   : > { %2344 = shalt.err (!%p2341_p1)
}
  0x3a   : > { %s2345_s19 = scalar_lea.vmem %s2527_s6, 6272  ;;  %s2403_s27 = smov [#allocation3]  }
  0x3b   : > { %p2346_p4 = scmp.ne.s32.totalorder %s2527_s6, %s2345_s19  ;;  %s2350_s7 = sshll.u32 %s2403_s27, 4  ;;  %s2351_s7 = int_to_ptr.vmem [resolvable:$false] %s2350_s7 }
  0x3c   : > { %s2352_s8 = scalar_lea.vmem %s2351_s7, 12544  ;;  %p2353_p10 = scmp.lt.s32.totalorder %s2527_s6, %s2351_s7 }
  0x3d   : > { %p2348_p5 = pnand %p2346_p4, %p2332_p11  ;;  %p2354_p12 = scmp.lt.s32.totalorder %s2352_s8, %s2345_s19 }
  0x3f   : > { %p2349_p9 = pneg %p2348_p5  ;;  %p2355_p0 = por %p2354_p12, %p2353_p10 }
  0x41   : > { %p2356_p2 = pnand %p2355_p0, %p2349_p9 }
  0x43   : > { %2359 = shalt.err (!%p2356_p2)
}
  0x44   : > { %s2404_s9 = smov 448   ;;  %s2405_s10 = smov 28  }
  0x45   : > { %2076 = dma.hbm_to_vmem [thread:$0]  (!%p2523_p7), %s2521_s11, 6272, %s2527_s6, %s2529_s12, %s2404_s9, %s2404_s9, %s2405_s10  }
  0x46   : > { %p2919_p11 = scmp.ne.s32.totalorder %s2916_s26, 0 }
  0x47   : > { %s222_s29 = sand.u32 (!%p2919_p11), 1, %s2390_s21   ;;  %p2920_p13 = scmp.ne.s32.totalorder (!%p2919_p11), %s2915_s25, 0 }
  0x48   : > { %220 = sbr.rel (%p2919_p11) target bundleno = 622 (0x26e), region = 40  ;;  %s223_s14 = scalar_lea.sflag (!%p2919_p11), [#allocation4], %s222_s29 }
  0x49   : > { %s2062_s13 = smul.u32 (!%p2919_p11), 392, %s222_s29 }
  0x4b   : > { %s2560_s15 = scalar_lea.vmem (!%p2919_p11), [#allocation3], %s2062_s13 }
  0x4f   : > { %2377 = dma.done.wait (%p2920_p13), %s223_s14, 6272  }
  0x50   : > { %2379 = vsyncadd (%p2920_p13), %s223_s14, 4294961024  ;;  %p2921_p3 = scmp.ne.s32.totalorder %s2914_s24, 0 }
  0x52   : > { %2381 = dma.done.wait (%p2921_p3), [#allocation6], 7168  }
  0x53   : > { %2383 = vsyncadd (%p2921_p3), [#allocation6], 4294960128  ;;  %v2120_v0 = vld [vmem:[#allocation5 + $0x40] sm:$0xff]   ;;  %v2124_v4 = vld [vmem:[#allocation5 + $0x48] sm:$0xff]   ;;  %v2406_v38 = vmov 0.0   ;;  %vm2407_vm0 = vmmov 0  }
  0x54   : > { %v2121_v1 = vld [vmem:[#allocation5] sm:$0xff]   ;;  %1827 = vmatprep.subr.bf16.mxu0 %v2120_v0  ;;  %v2125_v5 = vld [vmem:[#allocation5 + $0x8] sm:$0xff]   ;;  %v2128_v8 = vld [vmem:[#allocation5 + $0x50] sm:$0xff]   ;;  %s1475_s28 = sld [smem:[#allocation2]]  ;;  %s258_s6 = smul.u32 14, %s1709_s4 }
  0x55   : > { %v2122_v2 = vld [vmem:[#allocation5 + $0xc0] sm:$0xff]   ;;  %1828 = vmatpush3.bf16.msra.mxu0 %v2121_v1  ;;  %v2126_v6 = vld [vmem:[#allocation5 + $0xc8] sm:$0xff]   ;;  %v2129_v9 = vld [vmem:[#allocation5 + $0x10] sm:$0xff]  }
  0x56   : > { %v2123_v3 = vld [vmem:[#allocation5 + $0x80] sm:$0xff]   ;;  %1885 = vmatprep.subr.bf16.mxu1 %v2122_v2  ;;  %1829 = vmatprep.subr.bf16.mxu0 %v2124_v4  ;;  %v2127_v7 = vld [vmem:[#allocation5 + $0x88] sm:$0xff]   ;;  %v2130_v10 = vld [vmem:[#allocation5 + $0xd0] sm:$0xff]   ;;  %p259_p7 = scmp.lt.s32.totalorder %s258_s6, 27 }
  0x57   : > { %1886 = vmatpush3.bf16.msra.mxu1 %v2123_v3  ;;  %v2131_v11 = vld [vmem:[#allocation5 + $0x90] sm:$0xff]   ;;  %v2132_v12 = vld [vmem:[#allocation5 + $0x58] sm:$0xff]   ;;  %v2136_v16 = vld [vmem:[#allocation5 + $0x60] sm:$0xff]  }
  0x58   : > { %1887 = vmatprep.subr.bf16.mxu1 %v2126_v6  ;;  %v2133_v13 = vld [vmem:[#allocation5 + $0x18] sm:$0xff]   ;;  %v2137_v17 = vld [vmem:[#allocation5 + $0x20] sm:$0xff]   ;;  %v2140_v20 = vld [vmem:[#allocation5 + $0x68] sm:$0xff]   ;;  %s2928_s6 = smov (!%p259_p7, %s258_s6), 27 }
  0x59   : > { %1830 = vmatpush3.bf16.msra.mxu0 %v2125_v5  ;;  %v2134_v14 = vld [vmem:[#allocation5 + $0xd8] sm:$0xff]   ;;  %v2138_v18 = vld [vmem:[#allocation5 + $0xe0] sm:$0xff]   ;;  %v2141_v21 = vld [vmem:[#allocation5 + $0x28] sm:$0xff]   ;;  %s1717_s23 = sshll.u32 %s2928_s6, 3 }
  0x5a   : > { %1831 = vmatprep.subr.bf16.mxu0 %v2128_v8  ;;  %v2135_v15 = vld [vmem:[#allocation5 + $0x98] sm:$0xff]   ;;  %v2139_v19 = vld [vmem:[#allocation5 + $0xa0] sm:$0xff]   ;;  %v2142_v22 = vld [vmem:[#allocation5 + $0xe8] sm:$0xff]   ;;  %s2789_s16 = scalar_lea.vmem %s2909_s5, %s1717_s23 }
  0x5b   : > { %1888 = vmatpush3.bf16.msra.mxu1 %v2127_v7  ;;  %v2143_v23 = vld [vmem:[#allocation5 + $0xa8] sm:$0xff]   ;;  %v2144_v24 = vld [vmem:[#allocation5 + $0x70] sm:$0xff]   ;;  %v2148_v28 = vld [vmem:[#allocation5 + $0x78] sm:$0xff]  }
  0x5c   : > { %1889 = vmatprep.subr.bf16.mxu1 %v2130_v10  ;;  %v2145_v25 = vld [vmem:[#allocation5 + $0x30] sm:$0xff]   ;;  %v2149_v29 = vld [vmem:[#allocation5 + $0x38] sm:$0xff]   ;;  %v2155_v34 = vld [vmem:[#allocation5 + $0x140] sm:$0xff]  }
  0x5d   : > { %1832 = vmatpush3.bf16.msra.mxu0 %v2129_v9  ;;  %v2146_v26 = vld [vmem:[#allocation5 + $0xf0] sm:$0xff]   ;;  %v2150_v30 = vld [vmem:[#allocation5 + $0xf8] sm:$0xff]   ;;  %v2159_v37 = vld [vmem:[#allocation5 + $0x100] sm:$0xff]  }
  0x5e   : > { %1833 = vmatprep.subr.bf16.mxu0 %v2132_v12  ;;  %v2147_v27 = vld [vmem:[#allocation5 + $0xb0] sm:$0xff]   ;;  %v2154_v33 = vld [vmem:[#allocation5 + $0xb8] sm:$0xff]   ;;  %v2160_v39 = vld [vmem:[#allocation5 + $0x180] sm:$0xff]  }
  0x5f   : > { %1890 = vmatpush3.bf16.msra.mxu1 %v2131_v11  ;;  %v2151_v31 = vld [vmem:[%s2560_s15] ss:$28 sps:$4 sm:$0xff]   ;;  %v2156_v35 = vld [vmem:[%s2560_s15 + $0x8] ss:$28 sps:$4 sm:$0xff]   ;;  %v2164_v42 = vld [vmem:[%s2560_s15 + $0x38] ss:$28 sps:$4 sm:$0xff]  }
  0x60   : > { %1891 = vmatprep.subr.bf16.mxu1 %v2134_v14  ;;  %v2153_v32 = vld [vmem:[%s2560_s15 + $0x4] ss:$28 sps:$4 sm:$0xff]   ;;  %v2158_v36 = vld [vmem:[%s2560_s15 + $0xc] ss:$28 sps:$4 sm:$0xff]   ;;  %v2161_v40 = vld [vmem:[%s2560_s15 + $0x3c] ss:$28 sps:$4 sm:$0xff]  }
  0x61   : > { %1834 = vmatpush3.bf16.msra.mxu0 %v2133_v13  ;;  %1060 = vmatprep.mubr.bf16.mxu0 %v2153_v32  ;;  %v2163_v41 = vld [vmem:[#allocation5 + $0x148] sm:$0xff]   ;;  %v2166_v44 = vld [vmem:[%s2560_s15 + $0x44] ss:$28 sps:$4 sm:$0xff]   ;;  %v2181_v56 = vld [vmem:[%s2560_s15 + $0xac] ss:$28 sps:$4 sm:$0xff]  }
  0x62   : > { %1835 = vmatprep.subr.bf16.mxu0 %v2136_v16  ;;  %1149 = vmatprep.mubr.bf16.mxu1 %v2158_v36  ;;  %v2165_v43 = vld [vmem:[#allocation5 + $0x108] sm:$0xff]   ;;  %v2170_v47 = vld [vmem:[#allocation5 + $0x150] sm:$0xff]   ;;  %v2179_v54 = vld [vmem:[#allocation5 + $0x158] sm:$0xff]  }
  0x63   : > { %1892 = vmatpush3.bf16.msra.mxu1 %v2135_v15  ;;  %v2168_v45 = vld [vmem:[%s2560_s15 + $0x40] ss:$28 sps:$4 sm:$0xff]   ;;  %v2171_v48 = vld [vmem:[%s2560_s15 + $0x74] ss:$28 sps:$4 sm:$0xff]   ;;  %v2183_v57 = vld [vmem:[%s2560_s15 + $0xa8] ss:$28 sps:$4 sm:$0xff]  }
  0x64   : > { %1893 = vmatprep.subr.bf16.mxu1 %v2138_v18  ;;  %v2169_v46 = vld [vmem:[#allocation5 + $0x188] sm:$0xff]   ;;  %v2173_v49 = vld [vmem:[#allocation5 + $0x110] sm:$0xff]   ;;  %v2180_v55 = vld [vmem:[#allocation5 + $0x118] sm:$0xff]  }
  0x65   : > { %1836 = vmatpush3.bf16.msra.mxu0 %v2137_v17  ;;  %v2174_v50 = vld [vmem:[%s2560_s15 + $0x70] ss:$28 sps:$4 sm:$0xff]   ;;  %v2175_v51 = vld [vmem:[%s2560_s15 + $0x7c] ss:$28 sps:$4 sm:$0xff]   ;;  %v2190_v62 = vld [vmem:[%s2560_s15 + $0xe4] ss:$28 sps:$4 sm:$0xff]  }
  0x66   : > { %1837 = vmatprep.subr.bf16.mxu0 %v2140_v20  ;;  %v2177_v52 = vld [vmem:[%s2560_s15 + $0x78] ss:$28 sps:$4 sm:$0xff]   ;;  %v2187_v59 = vld [vmem:[#allocation5 + $0x198] sm:$0xff]  }
  0x67   : > { %1894 = vmatpush3.bf16.msra.mxu1 %v2139_v19  ;;  %v2178_v53 = vld [vmem:[#allocation5 + $0x190] sm:$0xff]   ;;  %v2184_v58 = vld [vmem:[%s2560_s15 + $0xb4] ss:$28 sps:$4 sm:$0xff]   ;;  %v2193_v0 = vld [vmem:[%s2560_s15 + $0xec] ss:$28 sps:$4 sm:$0xff]  }
  0x68   : > { %1895 = vmatprep.subr.bf16.mxu1 %v2142_v22  ;;  %v2188_v60 = vld [vmem:[#allocation5 + $0x160] sm:$0xff]   ;;  %v2197_v2 = vld [vmem:[#allocation5 + $0x168] sm:$0xff]   ;;  %v2202_v7 = vld [vmem:[%s2560_s15 + $0x124] ss:$28 sps:$4 sm:$0xff]  }
  0x69   : > { %1838 = vmatpush3.bf16.msra.mxu0 %v2141_v21  ;;  %v2189_v61 = vld [vmem:[#allocation5 + $0x120] sm:$0xff]   ;;  %v2198_v3 = vld [vmem:[#allocation5 + $0x128] sm:$0xff]   ;;  %v2206_v9 = vld [vmem:[#allocation5 + $0x170] sm:$0xff]  }
  0x6a   : > { %1839 = vmatprep.subr.bf16.mxu0 %v2144_v24  ;;  %v2186_v63 = vld [vmem:[%s2560_s15 + $0xb0] ss:$28 sps:$4 sm:$0xff]   ;;  %v2192_v4 = vld [vmem:[%s2560_s15 + $0xe0] ss:$28 sps:$4 sm:$0xff]   ;;  %v2195_v5 = vld [vmem:[%s2560_s15 + $0xe8] ss:$28 sps:$4 sm:$0xff]  }
  0x6b   : > { %1896 = vmatpush3.bf16.msra.mxu1 %v2143_v23  ;;  %v2196_v1 = vld [vmem:[#allocation5 + $0x1a0] sm:$0xff]   ;;  %v2199_v6 = vld [vmem:[%s2560_s15 + $0x11c] ss:$28 sps:$4 sm:$0xff]   ;;  %v2214_v14 = vld [vmem:[#allocation5 + $0x178] sm:$0xff]  }
  0x6c   : > { %1897 = vmatprep.subr.bf16.mxu1 %v2146_v26  ;;  %v2204_v8 = vld [vmem:[#allocation5 + $0x1a8] sm:$0xff]   ;;  %v2207_v10 = vld [vmem:[#allocation5 + $0x130] sm:$0xff]   ;;  %v2216_v15 = vld [vmem:[#allocation5 + $0x138] sm:$0xff]  }
  0x6d   : > { %1840 = vmatpush3.bf16.msra.mxu0 %v2145_v25  ;;  %v2211_v11 = vld [vmem:[#allocation5 + $0x1b0] sm:$0xff]   ;;  %v2208_v13 = vld [vmem:[%s2560_s15 + $0x154] ss:$28 sps:$4 sm:$0xff]   ;;  %v2220_v18 = vld [vmem:[#allocation5 + $0x1b8] sm:$0xff]  }
  0x6e   : > { %1841 = vmatprep.subr.bf16.mxu0 %v2148_v28  ;;  %v2201_v12 = vld [vmem:[%s2560_s15 + $0x118] ss:$28 sps:$4 sm:$0xff]   ;;  %v2205_v16 = vld [vmem:[%s2560_s15 + $0x120] ss:$28 sps:$4 sm:$0xff]   ;;  %v2210_v19 = vld [vmem:[%s2560_s15 + $0x150] ss:$28 sps:$4 sm:$0xff]  }
  0x6f   : > { %1898 = vmatpush3.bf16.msra.mxu1 %v2147_v27  ;;  %v2212_v17 = vld [vmem:[%s2560_s15 + $0x15c] ss:$28 sps:$4 sm:$0xff]   ;;  %v2219_v20 = vld [vmem:[%s2560_s15 + $0x14] ss:$28 sps:$4 sm:$0xff]   ;;  %v2222_v23 = vld [vmem:[%s2560_s15 + $0x4c] ss:$28 sps:$4 sm:$0xff]  }
  0x70   : > { %1899 = vmatprep.subr.bf16.mxu1 %v2150_v30  ;;  %v2215_v21 = vld [vmem:[%s2560_s15 + $0x158] ss:$28 sps:$4 sm:$0xff]   ;;  %v2217_v22 = vld [vmem:[%s2560_s15 + $0x10] ss:$28 sps:$4 sm:$0xff]   ;;  %v2224_v25 = vld [vmem:[%s2560_s15 + $0x48] ss:$28 sps:$4 sm:$0xff]  }
  0x71   : > { %1842 = vmatpush3.bf16.msra.mxu0 %v2149_v29  ;;  %v2221_v24 = vld [vmem:[%s2560_s15 + $0x18] ss:$28 sps:$4 sm:$0xff]   ;;  %v2226_v26 = vld [vmem:[%s2560_s15 + $0x84] ss:$28 sps:$4 sm:$0xff]   ;;  %v2225_v27 = vld [vmem:[%s2560_s15 + $0x50] ss:$28 sps:$4 sm:$0xff]  }
  0x72   : > { %1943 = vmatprep.subr.bf16.mxu0 %v2155_v34  ;;  %v2228_v28 = vld [vmem:[%s2560_s15 + $0x80] ss:$28 sps:$4 sm:$0xff]   ;;  %v2229_v30 = vld [vmem:[%s2560_s15 + $0x88] ss:$28 sps:$4 sm:$0xff]   ;;  %v2234_v32 = vld [vmem:[%s2560_s15 + $0xf4] ss:$28 sps:$4 sm:$0xff]  }
  0x73   : > { %1900 = vmatpush3.bf16.msra.mxu1 %v2154_v33  ;;  %v2230_v29 = vld [vmem:[%s2560_s15 + $0xbc] ss:$28 sps:$4 sm:$0xff]   ;;  %v2236_v34 = vld [vmem:[%s2560_s15 + $0xf0] ss:$28 sps:$4 sm:$0xff]  }
  0x74   : > { %1061 = vmatmul.mubr.bf16.vlgmr.msra.gmra.mrb[0].mxu0 %v2151_v31  ;;  %2016 = vmatprep.subr.bf16.mxu1 %v2406_v38  ;;  %v2232_v31 = vld [vmem:[%s2560_s15 + $0xb8] ss:$28 sps:$4 sm:$0xff]   ;;  %v2233_v33 = vld [vmem:[%s2560_s15 + $0xc0] ss:$28 sps:$4 sm:$0xff]  }
  0x75   : > { %1944 = vmatpush3.bf16.msra.mxu0 %v2159_v37  ;;  %1068 = vmatprep.mubr.bf16.mxu0 %v2161_v40  ;;  %v2237_v36 = vld [vmem:[%s2560_s15 + $0xf8] ss:$28 sps:$4 sm:$0xff]   ;;  %v2240_v37 = vld [vmem:[%s2560_s15 + $0x128] ss:$28 sps:$4 sm:$0xff]   ;;  %v2241_v40 = vld [vmem:[%s2560_s15 + $0x130] ss:$28 sps:$4 sm:$0xff]  }
  0x76   : > { %1150 = vmatmul.mubr.bf16.vlgmr.msra.gmra.mrb[0].mxu1 %v2156_v35  ;;  %1945 = vmatprep.subr.bf16.mxu0 %v2163_v41  ;;  %v2238_v35 = vld [vmem:[%s2560_s15 + $0x12c] ss:$28 sps:$4 sm:$0xff]   ;;  %v2244_v41 = vld [vmem:[%s2560_s15 + $0x160] ss:$28 sps:$4 sm:$0xff]  }
  0x77   : > { %2017 = vmatpush3.bf16.msra.mxu1 %v2160_v39  ;;  %1157 = vmatprep.mubr.bf16.mxu1 %v2166_v44  ;;  %v2242_v39 = vld [vmem:[%s2560_s15 + $0x164] ss:$28 sps:$4 sm:$0xff]  }
  0x78   : > { %2018 = vmatprep.subr.bf16.mxu1 %v2406_v38  ;;  %v2644_v44 = vld [vmem:[%s2906_s2] ss:$0 sm:$0xff] }
  0x79   : > { %1946 = vmatpush3.bf16.msra.mxu0 %v2165_v43 }
  0x7a   : > { %1947 = vmatprep.subr.bf16.mxu0 %v2170_v47 }
  0x7b   : > { %2019 = vmatpush3.bf16.msra.mxu1 %v2169_v46 }
  0x7c   : > { %1069 = vmatmul.mubr.bf16.gmra.mrb[4].mxu0 %v2164_v42  ;;  %2020 = vmatprep.subr.bf16.mxu1 %v2406_v38  ;;  %v2245_v42 = vld [vmem:[%s2560_s15 + $0x168] ss:$28 sps:$4 sm:$0xff]  }
  0x7d   : > { %1076 = vmatprep.mubr.bf16.mxu0 %v2171_v48  ;;  %1948 = vmatpush3.bf16.msra.mxu0 %v2173_v49 }
  0x7e   : > { %1158 = vmatmul.mubr.bf16.gmra.mrb[4].mxu1 %v2168_v45  ;;  %1949 = vmatprep.subr.bf16.mxu0 %v2179_v54 }
  0x7f   : > { %1165 = vmatprep.mubr.bf16.mxu1 %v2175_v51  ;;  %2021 = vmatpush3.bf16.msra.mxu1 %v2178_v53 }
  0x80   : > { %2022 = vmatprep.subr.bf16.mxu1 %v2406_v38 }
  0x81   : > { %1950 = vmatpush3.bf16.msra.mxu0 %v2180_v55 }
  0x82   : > { %1951 = vmatprep.subr.bf16.mxu0 %v2188_v60 }
  0x83   : > { %2023 = vmatpush3.bf16.msra.mxu1 %v2187_v59 }
  0x84   : > { %1077 = vmatmul.mubr.bf16.gmra.mrb[8].mxu0 %v2174_v50  ;;  %2024 = vmatprep.subr.bf16.mxu1 %v2406_v38 }
  0x85   : > { %1084 = vmatprep.mubr.bf16.mxu0 %v2181_v56  ;;  %1952 = vmatpush3.bf16.msra.mxu0 %v2189_v61 }
  0x86   : > { %1166 = vmatmul.mubr.bf16.gmra.mrb[8].mxu1 %v2177_v52  ;;  %1953 = vmatprep.subr.bf16.mxu0 %v2197_v2 }
  0x87   : > { %1173 = vmatprep.mubr.bf16.mxu1 %v2184_v58  ;;  %2025 = vmatpush3.bf16.msra.mxu1 %v2196_v1 }
  0x88   : > { %2026 = vmatprep.subr.bf16.mxu1 %v2406_v38 }
  0x89   : > { %1954 = vmatpush3.bf16.msra.mxu0 %v2198_v3 }
  0x8a   : > { %1955 = vmatprep.subr.bf16.mxu0 %v2206_v9 }
  0x8b   : > { %2027 = vmatpush3.bf16.msra.mxu1 %v2204_v8 }
  0x8c   : > { %1085 = vmatmul.mubr.bf16.gmra.mrb[12].mxu0 %v2183_v57  ;;  %2028 = vmatprep.subr.bf16.mxu1 %v2406_v38 }
  0x8d   : > { %1092 = vmatprep.mubr.bf16.mxu0 %v2190_v62  ;;  %1956 = vmatpush3.bf16.msra.mxu0 %v2207_v10 }
  0x8e   : > { %1174 = vmatmul.mubr.bf16.gmra.mrb[12].mxu1 %v2186_v63  ;;  %1957 = vmatprep.subr.bf16.mxu0 %v2214_v14 }
  0x8f   : > { %1181 = vmatprep.mubr.bf16.mxu1 %v2193_v0  ;;  %2029 = vmatpush3.bf16.msra.mxu1 %v2211_v11 }
  0x90   : > { %2030 = vmatprep.subr.bf16.mxu1 %v2406_v38 }
  0x91   : > { %1958 = vmatpush3.bf16.msra.mxu0 %v2216_v15 }
  0x93   : > { %2031 = vmatpush3.bf16.msra.mxu1 %v2220_v18 }
  0x94   : > { %1093 = vmatmul.mubr.bf16.gmra.mrb[16].mxu0 %v2192_v4 }
  0x95   : > { %1100 = vmatprep.mubr.bf16.mxu0 %v2199_v6 }
  0x96   : > { %1182 = vmatmul.mubr.bf16.gmra.mrb[16].mxu1 %v2195_v5 }
  0x97   : > { %1189 = vmatprep.mubr.bf16.mxu1 %v2202_v7 }
  0x9c   : > { %1101 = vmatmul.mubr.bf16.gmra.mrb[20].mxu0 %v2201_v12 }
  0x9d   : > { %1108 = vmatprep.mubr.bf16.mxu0 %v2208_v13 }
  0x9e   : > { %1190 = vmatmul.mubr.bf16.gmra.mrb[20].mxu1 %v2205_v16 }
  0x9f   : > { %1197 = vmatprep.mubr.bf16.mxu1 %v2212_v17 }
  0xa4   : > { %1109 = vmatmul.mubr.bf16.gmra.mrb[24].mxu0 %v2210_v19 }
  0xa5   : > { %1238 = vmatprep.mubr.bf16.mxu0 %v2219_v20 }
  0xa6   : > { %1198 = vmatmul.mubr.bf16.gmra.mrb[24].mxu1 %v2215_v21 }
  0xa7   : > { %2032 = vmatprep.mubr.msk.bf16.mxu1 %vm2407_vm0, %v2406_v38 }
  0xac   : > { %1239 = vmatmul.mubr.bf16.vlgmr.msra.gmra.mrb[28].mxu0 %v2217_v22 }
  0xad   : > { %1246 = vmatprep.mubr.bf16.mxu0 %v2222_v23 }
  0xae   : > { %2033 = vmatmul.mubr.bf16.vlgmr.msra.gmra.mrb[28].mxu1 %v2221_v24 }
  0xaf   : > { %2036 = vmatprep.mubr.msk.bf16.mxu1 %vm2407_vm0, %v2406_v38 }
  0xb4   : > { %1247 = vmatmul.mubr.bf16.gmra.mrb[32].mxu0 %v2224_v25 }
  0xb5   : > { %1254 = vmatprep.mubr.bf16.mxu0 %v2226_v26 }
  0xb6   : > { %2037 = vmatmul.mubr.bf16.gmra.mrb[32].mxu1 %v2225_v27 }
  0xb7   : > { %2040 = vmatprep.mubr.msk.bf16.mxu1 %vm2407_vm0, %v2406_v38 }
  0xbc   : > { %1255 = vmatmul.mubr.bf16.gmra.mrb[36].mxu0 %v2228_v28 }
  0xbd   : > { %1262 = vmatprep.mubr.bf16.mxu0 %v2230_v29 }
  0xbe   : > { %2041 = vmatmul.mubr.bf16.gmra.mrb[36].mxu1 %v2229_v30 }
  0xbf   : > { %2044 = vmatprep.mubr.msk.bf16.mxu1 %vm2407_vm0, %v2406_v38 }
  0xc4   : > { %1263 = vmatmul.mubr.bf16.gmra.mrb[40].mxu0 %v2232_v31 }
  0xc5   : > { %1270 = vmatprep.mubr.bf16.mxu0 %v2234_v32 }
  0xc6   : > { %2045 = vmatmul.mubr.bf16.gmra.mrb[40].mxu1 %v2233_v33 }
  0xc7   : > { %2048 = vmatprep.mubr.msk.bf16.mxu1 %vm2407_vm0, %v2406_v38 }
  0xcc   : > { %1271 = vmatmul.mubr.bf16.gmra.mrb[44].mxu0 %v2236_v34 }
  0xcd   : > { %1278 = vmatprep.mubr.bf16.mxu0 %v2238_v35 }
  0xce   : > { %2049 = vmatmul.mubr.bf16.gmra.mrb[44].mxu1 %v2237_v36 }
  0xcf   : > { %2052 = vmatprep.mubr.msk.bf16.mxu1 %vm2407_vm0, %v2406_v38 }
  0xd4   : > { %1279 = vmatmul.mubr.bf16.gmra.mrb[48].mxu0 %v2240_v37 }
  0xd5   : > { %1286 = vmatprep.mubr.bf16.mxu0 %v2242_v39 }
  0xd6   : > { %2053 = vmatmul.mubr.bf16.gmra.mrb[48].mxu1 %v2241_v40 }
  0xd7   : > { %2056 = vmatprep.mubr.msk.bf16.mxu1 %vm2407_vm0, %v2406_v38 }
  0xdc   : > { %1287 = vmatmul.mubr.bf16.gmra.mrb[52].mxu0 %v2244_v41 }
  0xde   : > { %2057 = vmatmul.mubr.bf16.gmra.mrb[52].mxu1 %v2245_v42 }
 0x147   : > { %v1843_v43 = vpop.f32.mrb[0].mxu0 }
 0x148   : > { %v1844_v45 = vpop.f32.mrb[1].mxu0 }
 0x149   : > { %v1845_v46 = vadd.f32 %v1844_v45, %v1843_v43  ;;  %v1846_v47 = vpop.f32.mrb[2].mxu0  ;;  %v1901_v48 = vpop.f32.mrb[0].mxu1 }
 0x14a   : > { %v1847_v49 = vpop.f32.mrb[3].mxu0  ;;  %v1902_v52 = vpop.f32.mrb[1].mxu1 }
 0x14b   : > { %v1063_v50 = vadd.f32 %v1845_v46, %v2644_v44  ;;  %v1848_v51 = vadd.f32 %v1847_v49, %v1846_v47  ;;  %v1903_v53 = vadd.f32 %v1902_v52, %v1901_v48  ;;  %v1904_v38 = vpop.f32.mrb[2].mxu1 }
 0x14c   : > { %v1905_v55 = vpop.f32.mrb[3].mxu1 }
 0x14d   : > { %v1066_v54 = vadd.f32 %v1848_v51, %v2644_v44  ;;  %v2648_v56 = vadd.f32 %v1903_v53, %v1063_v50  ;;  %v1906_v57 = vadd.f32 %v1905_v55, %v1904_v38 }
 0x14f   : > { %v1849_v58 = vpop.f32.mrb[4].mxu0  ;;  %v2650_v59 = vadd.f32 %v1906_v57, %v1066_v54 }
 0x150   : > { %v1850_v60 = vpop.f32.mrb[5].mxu0 }
 0x151   : > { %v1851_v61 = vadd.f32 %v1850_v60, %v1849_v58  ;;  %v1852_v62 = vpop.f32.mrb[6].mxu0  ;;  %v1907_v63 = vpop.f32.mrb[4].mxu1 }
 0x152   : > { %v1853_v0 = vpop.f32.mrb[7].mxu0  ;;  %v1908_v3 = vpop.f32.mrb[5].mxu1 }
 0x153   : > { %v1071_v1 = vadd.f32 %v1851_v61, %v2644_v44  ;;  %v1854_v2 = vadd.f32 %v1853_v0, %v1852_v62  ;;  %v1909_v4 = vadd.f32 %v1908_v3, %v1907_v63  ;;  %v1910_v5 = vpop.f32.mrb[6].mxu1 }
 0x154   : > { %v1911_v7 = vpop.f32.mrb[7].mxu1 }
 0x155   : > { %v1074_v6 = vadd.f32 %v1854_v2, %v2644_v44  ;;  %v2654_v8 = vadd.f32 %v1909_v4, %v1071_v1  ;;  %v1912_v9 = vadd.f32 %v1911_v7, %v1910_v5 }
 0x157   : > { %v1855_v10 = vpop.f32.mrb[8].mxu0  ;;  %v2656_v11 = vadd.f32 %v1912_v9, %v1074_v6 }
 0x158   : > { %v1856_v12 = vpop.f32.mrb[9].mxu0 }
 0x159   : > { %v1857_v13 = vadd.f32 %v1856_v12, %v1855_v10  ;;  %v1858_v14 = vpop.f32.mrb[10].mxu0  ;;  %v1913_v15 = vpop.f32.mrb[8].mxu1 }
 0x15a   : > { %v1859_v16 = vpop.f32.mrb[11].mxu0  ;;  %v1914_v19 = vpop.f32.mrb[9].mxu1 }
 0x15b   : > { %v1079_v17 = vadd.f32 %v1857_v13, %v2644_v44  ;;  %v1860_v18 = vadd.f32 %v1859_v16, %v1858_v14  ;;  %v1915_v20 = vadd.f32 %v1914_v19, %v1913_v15  ;;  %v1916_v21 = vpop.f32.mrb[10].mxu1 }
 0x15c   : > { %v1917_v23 = vpop.f32.mrb[11].mxu1 }
 0x15d   : > { %v1082_v22 = vadd.f32 %v1860_v18, %v2644_v44  ;;  %v2660_v24 = vadd.f32 %v1915_v20, %v1079_v17  ;;  %v1918_v25 = vadd.f32 %v1917_v23, %v1916_v21 }
 0x15f   : > { %v1861_v26 = vpop.f32.mrb[12].mxu0  ;;  %v2662_v27 = vadd.f32 %v1918_v25, %v1082_v22 }
 0x160   : > { %v1862_v28 = vpop.f32.mrb[13].mxu0 }
 0x161   : > { %v1863_v29 = vadd.f32 %v1862_v28, %v1861_v26  ;;  %v1864_v30 = vpop.f32.mrb[14].mxu0  ;;  %v1919_v31 = vpop.f32.mrb[12].mxu1 }
 0x162   : > { %v1865_v32 = vpop.f32.mrb[15].mxu0  ;;  %v1920_v35 = vpop.f32.mrb[13].mxu1 }
 0x163   : > { %v1087_v33 = vadd.f32 %v1863_v29, %v2644_v44  ;;  %v1866_v34 = vadd.f32 %v1865_v32, %v1864_v30  ;;  %v1921_v36 = vadd.f32 %v1920_v35, %v1919_v31  ;;  %v1922_v37 = vpop.f32.mrb[14].mxu1 }
 0x164   : > { %v1923_v40 = vpop.f32.mrb[15].mxu1 }
 0x165   : > { %v1090_v39 = vadd.f32 %v1866_v34, %v2644_v44  ;;  %v2666_v41 = vadd.f32 %v1921_v36, %v1087_v33  ;;  %v1924_v42 = vadd.f32 %v1923_v40, %v1922_v37 }
 0x167   : > { %v1867_v43 = vpop.f32.mrb[16].mxu0  ;;  %v2668_v45 = vadd.f32 %v1924_v42, %v1090_v39 }
 0x168   : > { %v1868_v46 = vpop.f32.mrb[17].mxu0 }
 0x169   : > { %v1869_v47 = vadd.f32 %v1868_v46, %v1867_v43  ;;  %v1870_v48 = vpop.f32.mrb[18].mxu0  ;;  %v1925_v49 = vpop.f32.mrb[16].mxu1 }
 0x16a   : > { %v1871_v50 = vpop.f32.mrb[19].mxu0  ;;  %v1926_v53 = vpop.f32.mrb[17].mxu1 }
 0x16b   : > { %v1095_v51 = vadd.f32 %v1869_v47, %v2644_v44  ;;  %v1872_v52 = vadd.f32 %v1871_v50, %v1870_v48  ;;  %v1927_v38 = vadd.f32 %v1926_v53, %v1925_v49  ;;  %v1928_v54 = vpop.f32.mrb[18].mxu1  ;;  %v2693_v53 = vld [vmem:[%s2907_s3] ss:$0 sm:$0xff] }
 0x16c   : > { %v1929_v57 = vpop.f32.mrb[19].mxu1 }
 0x16d   : > { %v1098_v55 = vadd.f32 %v1872_v52, %v2644_v44  ;;  %v2672_v58 = vadd.f32 %v1927_v38, %v1095_v51  ;;  %v1930_v60 = vadd.f32 %v1929_v57, %v1928_v54 }
 0x16f   : > { %v1873_v61 = vpop.f32.mrb[20].mxu0  ;;  %v2674_v62 = vadd.f32 %v1930_v60, %v1098_v55 }
 0x170   : > { %v1874_v63 = vpop.f32.mrb[21].mxu0 }
 0x171   : > { %v1875_v0 = vadd.f32 %v1874_v63, %v1873_v61  ;;  %v1876_v1 = vpop.f32.mrb[22].mxu0  ;;  %v1931_v2 = vpop.f32.mrb[20].mxu1 }
 0x172   : > { %v1877_v3 = vpop.f32.mrb[23].mxu0  ;;  %v1932_v6 = vpop.f32.mrb[21].mxu1 }
 0x173   : > { %v1103_v4 = vadd.f32 %v1875_v0, %v2644_v44  ;;  %v1878_v5 = vadd.f32 %v1877_v3, %v1876_v1  ;;  %v1933_v7 = vadd.f32 %v1932_v6, %v1931_v2  ;;  %v1934_v9 = vpop.f32.mrb[22].mxu1 }
 0x174   : > { %v1935_v12 = vpop.f32.mrb[23].mxu1 }
 0x175   : > { %v1106_v10 = vadd.f32 %v1878_v5, %v2644_v44  ;;  %v2678_v13 = vadd.f32 %v1933_v7, %v1103_v4  ;;  %v1936_v14 = vadd.f32 %v1935_v12, %v1934_v9 }
 0x177   : > { %v1879_v15 = vpop.f32.mrb[24].mxu0  ;;  %v2680_v16 = vadd.f32 %v1936_v14, %v1106_v10 }
 0x178   : > { %v1880_v17 = vpop.f32.mrb[25].mxu0 }
 0x179   : > { %v1881_v18 = vadd.f32 %v1880_v17, %v1879_v15  ;;  %v1882_v19 = vpop.f32.mrb[26].mxu0  ;;  %v1937_v20 = vpop.f32.mrb[24].mxu1 }
 0x17a   : > { %v1883_v21 = vpop.f32.mrb[27].mxu0  ;;  %v1938_v25 = vpop.f32.mrb[25].mxu1 }
 0x17b   : > { %v1111_v22 = vadd.f32 %v1881_v18, %v2644_v44  ;;  %v1884_v23 = vadd.f32 %v1883_v21, %v1882_v19  ;;  %v1939_v26 = vadd.f32 %v1938_v25, %v1937_v20  ;;  %v1940_v28 = vpop.f32.mrb[26].mxu1 }
 0x17c   : > { %v1941_v30 = vpop.f32.mrb[27].mxu1 }
 0x17d   : > { %v1114_v29 = vadd.f32 %v1884_v23, %v2644_v44  ;;  %v2684_v31 = vadd.f32 %v1939_v26, %v1111_v22  ;;  %v1942_v32 = vadd.f32 %v1941_v30, %v1940_v28 }
 0x17f   : > { %v1959_v33 = vpop.f32.mrb[28].mxu0  ;;  %v2686_v34 = vadd.f32 %v1942_v32, %v1114_v29 }
 0x180   : > { %v1960_v35 = vpop.f32.mrb[29].mxu0 }
 0x181   : > { %v1961_v36 = vadd.f32 %v1960_v35, %v1959_v33  ;;  %v1962_v37 = vpop.f32.mrb[30].mxu0  ;;  %v1329_v40 = vpop.f32.mrb[28].mxu1 }
 0x182   : > { %v1963_v39 = vpop.f32.mrb[31].mxu0  ;;  %v2034_v46 = vpop.f32.mrb[29].mxu1 }
 0x183   : > { %v1964_v42 = vadd.f32 %v1963_v39, %v1962_v37  ;;  %v1241_v43 = vadd.f32 %v1961_v36, %v2648_v56  ;;  %v1332_v47 = vpop.f32.mrb[30].mxu1 }
 0x184   : > { %v2035_v49 = vpop.f32.mrb[31].mxu1 }
 0x185   : > { %v1330_v48 = vadd.f32 %v1329_v40, %v1241_v43  ;;  %v1244_v44 = vadd.f32 %v1964_v42, %v2650_v59 }
 0x187   : > { %v1398_v50 = vmul.f32 0.01, %v1330_v48  ;;  %v1333_v51 = vadd.f32 %v1332_v47, %v1244_v44  ;;  %v1965_v52 = vpop.f32.mrb[32].mxu0  ;;  %vm1384_vm1 = vcmp.gt.f32.partialorder %v1330_v48, 0.0 }
 0x188   : > { %v1966_v38 = vpop.f32.mrb[33].mxu0 }
 0x189   : > { %v1399_v54 = vmul.f32 0.01, %v1333_v51  ;;  %v1967_v55 = vadd.f32 %v1966_v38, %v1965_v52  ;;  %v1968_v57 = vpop.f32.mrb[34].mxu0  ;;  %v1412_v56 = vsel %vm1384_vm1, %v1330_v48, %v1398_v50  ;;  %vm1385_vm2 = vcmp.gt.f32.partialorder %v1333_v51, 0.0  ;;  %v1337_v61 = vpop.f32.mrb[32].mxu1 }
 0x18a   : > { %v1969_v60 = vpop.f32.mrb[35].mxu0  ;;  %v1433_v59 = vmul.f32 %v2693_v53, %v1412_v56  ;;  %v2038_v1 = vpop.f32.mrb[33].mxu1 }
 0x18b   : > { %v1970_v63 = vadd.f32 %v1969_v60, %v1968_v57  ;;  %v1249_v0 = vadd.f32 %v1967_v55, %v2654_v8  ;;  %v1413_v2 = vsel %vm1385_vm2, %v1333_v51, %v1399_v54  ;;  %v1340_v3 = vpop.f32.mrb[34].mxu1 }
 0x18c   : > { %1447 = vadd.xlane.f32.xlu0 %v1433_v59  ;;  %v2039_v6 = vpop.f32.mrb[35].mxu1  ;;  %v1434_v7 = vmul.f32 %v2693_v53, %v1413_v2 }
 0x18d   : > { %v1338_v4 = vadd.f32 %v1337_v61, %v1249_v0  ;;  %v1252_v5 = vadd.f32 %v1970_v63, %v2656_v11 }
 0x18f   : > { %v1400_v9 = vmul.f32 0.01, %v1338_v4  ;;  %v1341_v10 = vadd.f32 %v1340_v3, %v1252_v5  ;;  %v1971_v12 = vpop.f32.mrb[36].mxu0  ;;  %vm1386_vm3 = vcmp.gt.f32.partialorder %v1338_v4, 0.0 }
 0x190   : > { %v1972_v14 = vpop.f32.mrb[37].mxu0  ;;  %1449 = vadd.xlane.f32.xlu0 %v1434_v7 }
 0x191   : > { %v1401_v15 = vmul.f32 0.01, %v1341_v10  ;;  %v1973_v17 = vadd.f32 %v1972_v14, %v1971_v12  ;;  %v1974_v18 = vpop.f32.mrb[38].mxu0  ;;  %v1414_v8 = vsel %vm1386_vm3, %v1338_v4, %v1400_v9  ;;  %vm1387_vm4 = vcmp.gt.f32.partialorder %v1341_v10, 0.0  ;;  %v1345_v20 = vpop.f32.mrb[36].mxu1 }
 0x192   : > { %v1975_v19 = vpop.f32.mrb[39].mxu0  ;;  %v1435_v21 = vmul.f32 %v2693_v53, %v1414_v8  ;;  %v2042_v23 = vpop.f32.mrb[37].mxu1 }
 0x193   : > { %v1976_v22 = vadd.f32 %v1975_v19, %v1974_v18  ;;  %v1257_v11 = vadd.f32 %v1973_v17, %v2660_v24  ;;  %v1415_v25 = vsel %vm1387_vm4, %v1341_v10, %v1401_v15  ;;  %v1348_v26 = vpop.f32.mrb[38].mxu1 }
 0x194   : > { %1451 = vadd.xlane.f32.xlu1 %v1435_v21  ;;  %v2043_v30 = vpop.f32.mrb[39].mxu1  ;;  %v1436_v32 = vmul.f32 %v2693_v53, %v1415_v25 }
 0x195   : > { %v1346_v28 = vadd.f32 %v1345_v20, %v1257_v11  ;;  %v1260_v29 = vadd.f32 %v1976_v22, %v2662_v27 }
 0x197   : > { %v1402_v33 = vmul.f32 0.01, %v1346_v28  ;;  %v1349_v35 = vadd.f32 %v1348_v26, %v1260_v29  ;;  %v1977_v36 = vpop.f32.mrb[40].mxu0  ;;  %vm1388_vm5 = vcmp.gt.f32.partialorder %v1346_v28, 0.0 }
 0x198   : > { %v1978_v37 = vpop.f32.mrb[41].mxu0  ;;  %1453 = vadd.xlane.f32.xlu1 %v1436_v32 }
 0x199   : > { %v1403_v39 = vmul.f32 0.01, %v1349_v35  ;;  %v1979_v40 = vadd.f32 %v1978_v37, %v1977_v36  ;;  %v1980_v42 = vpop.f32.mrb[42].mxu0  ;;  %v1416_v24 = vsel %vm1388_vm5, %v1346_v28, %v1402_v33  ;;  %vm1389_vm6 = vcmp.gt.f32.partialorder %v1349_v35, 0.0  ;;  %v1353_v46 = vpop.f32.mrb[40].mxu1 }
 0x19a   : > { %v1981_v43 = vpop.f32.mrb[43].mxu0  ;;  %v1437_v47 = vmul.f32 %v2693_v53, %v1416_v24  ;;  %v2046_v44 = vpop.f32.mrb[41].mxu1 }
 0x19b   : > { %v1982_v48 = vadd.f32 %v1981_v43, %v1980_v42  ;;  %v1265_v27 = vadd.f32 %v1979_v40, %v2666_v41  ;;  %v1417_v49 = vsel %vm1389_vm6, %v1349_v35, %v1403_v39  ;;  %v1356_v50 = vpop.f32.mrb[42].mxu1 }
 0x19c   : > { %1455 = vadd.xlane.f32.xlu0 %v1437_v47  ;;  %v1438_v51 = vmul.f32 %v2693_v53, %v1417_v49  ;;  %v2047_v54 = vpop.f32.mrb[43].mxu1 }
 0x19d   : > { %v1354_v52 = vadd.f32 %v1353_v46, %v1265_v27  ;;  %v1268_v38 = vadd.f32 %v1982_v48, %v2668_v45 }
 0x19e   : > { %1457 = vadd.xlane.f32.xlu1 %v1438_v51 }
 0x19f   : > { %v1404_v55 = vmul.f32 0.01, %v1354_v52  ;;  %v1357_v57 = vadd.f32 %v1356_v50, %v1268_v38  ;;  %v1983_v56 = vpop.f32.mrb[44].mxu0  ;;  %vm1390_vm7 = vcmp.gt.f32.partialorder %v1354_v52, 0.0 }
 0x1a0   : > { %v1984_v60 = vpop.f32.mrb[45].mxu0 }
 0x1a1   : > { %v1405_v61 = vmul.f32 0.01, %v1357_v57  ;;  %v1985_v59 = vadd.f32 %v1984_v60, %v1983_v56  ;;  %v1986_v63 = vpop.f32.mrb[46].mxu0  ;;  %v1418_v41 = vsel %vm1390_vm7, %v1354_v52, %v1404_v55  ;;  %vm1391_vm8 = vcmp.gt.f32.partialorder %v1357_v57, 0.0  ;;  %v1361_v1 = vpop.f32.mrb[44].mxu1 }
 0x1a2   : > { %v1987_v0 = vpop.f32.mrb[47].mxu0  ;;  %v1439_v2 = vmul.f32 %v2693_v53, %v1418_v41  ;;  %v2050_v45 = vpop.f32.mrb[45].mxu1  ;;  %vm1617_vm7 = vcmask 7168  }
 0x1a3   : > { %v1988_v3 = vadd.f32 %v1987_v0, %v1986_v63  ;;  %v1273_v4 = vadd.f32 %v1985_v59, %v2672_v58  ;;  %v1419_v5 = vsel %vm1391_vm8, %v1357_v57, %v1405_v61  ;;  %v1364_v6 = vpop.f32.mrb[46].mxu1  ;;  %v2721_v59 = vstv %s1475_s28 }
 0x1a4   : > { %1459 = vadd.xlane.f32.xlu0 %v1439_v2  ;;  %v1440_v7 = vmul.f32 %v2693_v53, %v1419_v5  ;;  %v2051_v12 = vpop.f32.mrb[47].mxu1 }
 0x1a5   : > { %v1362_v9 = vadd.f32 %v1361_v1, %v1273_v4  ;;  %v1276_v10 = vadd.f32 %v1988_v3, %v2674_v62 }
 0x1a6   : > { %1461 = vadd.xlane.f32.xlu1 %v1440_v7 }
 0x1a7   : > { %v1406_v14 = vmul.f32 0.01, %v1362_v9  ;;  %v1365_v15 = vadd.f32 %v1364_v6, %v1276_v10  ;;  %v1989_v17 = vpop.f32.mrb[48].mxu0  ;;  %vm1392_vm9 = vcmp.gt.f32.partialorder %v1362_v9, 0.0 }
 0x1a8   : > { %v1990_v18 = vpop.f32.mrb[49].mxu0 }
 0x1a9   : > { %v1407_v8 = vmul.f32 0.01, %v1365_v15  ;;  %v1991_v19 = vadd.f32 %v1990_v18, %v1989_v17  ;;  %v1992_v20 = vpop.f32.mrb[50].mxu0  ;;  %v1420_v58 = vsel %vm1392_vm9, %v1362_v9, %v1406_v14  ;;  %vm1393_vm10 = vcmp.gt.f32.partialorder %v1365_v15, 0.0  ;;  %v1369_v22 = vpop.f32.mrb[48].mxu1 }
 0x1aa   : > { %v1993_v21 = vpop.f32.mrb[51].mxu0  ;;  %v1441_v11 = vmul.f32 %v2693_v53, %v1420_v58  ;;  %v2054_v62 = vpop.f32.mrb[49].mxu1 }
 0x1ab   : > { %v1994_v23 = vadd.f32 %v1993_v21, %v1992_v20  ;;  %v1281_v25 = vadd.f32 %v1991_v19, %v2678_v13  ;;  %v1421_v26 = vsel %vm1393_vm10, %v1365_v15, %v1407_v8  ;;  %v1372_v28 = vpop.f32.mrb[50].mxu1 }
 0x1ac   : > { %1463 = vadd.xlane.f32.xlu0 %v1441_v11  ;;  %v1442_v29 = vmul.f32 %v2693_v53, %v1421_v26  ;;  %v2055_v33 = vpop.f32.mrb[51].mxu1 }
 0x1ad   : > { %v1370_v30 = vadd.f32 %v1369_v22, %v1281_v25  ;;  %v1284_v32 = vadd.f32 %v1994_v23, %v2680_v16 }
 0x1ae   : > { %1465 = vadd.xlane.f32.xlu1 %v1442_v29 }
 0x1af   : > { %v1408_v35 = vmul.f32 0.01, %v1370_v30  ;;  %v1373_v36 = vadd.f32 %v1372_v28, %v1284_v32  ;;  %v1995_v37 = vpop.f32.mrb[52].mxu0  ;;  %vm1394_vm11 = vcmp.gt.f32.partialorder %v1370_v30, 0.0 }
 0x1b0   : > { %v1996_v39 = vpop.f32.mrb[53].mxu0 }
 0x1b1   : > { %v1409_v40 = vmul.f32 0.01, %v1373_v36  ;;  %v1997_v42 = vadd.f32 %v1996_v39, %v1995_v37  ;;  %v1998_v24 = vpop.f32.mrb[54].mxu0  ;;  %v1422_v13 = vsel %vm1394_vm11, %v1370_v30, %v1408_v35  ;;  %vm1395_vm12 = vcmp.gt.f32.partialorder %v1373_v36, 0.0  ;;  %v1377_v46 = vpop.f32.mrb[52].mxu1 }
 0x1b2   : > { %v1999_v43 = vpop.f32.mrb[55].mxu0  ;;  %v1443_v47 = vmul.f32 %v2693_v53, %v1422_v13  ;;  %v2058_v16 = vpop.f32.mrb[53].mxu1 }
 0x1b3   : > { %v2000_v48 = vadd.f32 %v1999_v43, %v1998_v24  ;;  %v1289_v27 = vadd.f32 %v1997_v42, %v2684_v31  ;;  %v1423_v44 = vsel %vm1395_vm12, %v1373_v36, %v1409_v40  ;;  %v1380_v49 = vpop.f32.mrb[54].mxu1 }
 0x1b4   : > { %1467 = vadd.xlane.f32.xlu0 %v1443_v47  ;;  %v1444_v50 = vmul.f32 %v2693_v53, %v1423_v44  ;;  %v2059_v38 = vpop.f32.mrb[55].mxu1 }
 0x1b5   : > { %v1378_v51 = vadd.f32 %v1377_v46, %v1289_v27  ;;  %v1292_v52 = vadd.f32 %v2000_v48, %v2686_v34 }
 0x1b6   : > { %1469 = vadd.xlane.f32.xlu1 %v1444_v50 }
 0x1b7   : > { %v1410_v54 = vmul.f32 0.01, %v1378_v51  ;;  %v1381_v55 = vadd.f32 %v1380_v49, %v1292_v52  ;;  %vm1396_vm13 = vcmp.gt.f32.partialorder %v1378_v51, 0.0 }
 0x1b9   : > { %v1411_v57 = vmul.f32 0.01, %v1381_v55  ;;  %v1424_v56 = vsel %vm1396_vm13, %v1378_v51, %v1410_v54  ;;  %vm1397_vm14 = vcmp.gt.f32.partialorder %v1381_v55, 0.0 }
 0x1ba   : > { %v1445_v60 = vmul.f32 %v2693_v53, %v1424_v56 }
 0x1bb   : > { %v1425_v31 = vsel %vm1397_vm14, %v1381_v55, %v1411_v57 }
 0x1bc   : > { %1471 = vadd.xlane.f32.xlu0 %v1445_v60  ;;  %v1446_v61 = vmul.f32 %v2693_v53, %v1425_v31 }
 0x1be   : > { %1473 = vadd.xlane.f32.xlu1 %v1446_v61 }
 0x219   : > { %v1448_v63 = vpop.xlane.xlu0 %1447 }
 0x21a   : > { %v2724_v34 = vadd.f32 %v2721_v59, %v1448_v63 }
 0x21c   : > { %vm1491_vm15 = vcmp.ge.f32.partialorder %v2724_v34, 0.0  ;;  %v1505_v41 = vsub.f32 0.0, %v2724_v34 }
 0x21d   : > { %v1450_v0 = vpop.xlane.xlu0 %1449 }
 0x21e   : > { %v1519_v1 = vsel %vm1491_vm15, %v1505_v41, %v2724_v34  ;;  %v2732_v2 = vadd.f32 %v2721_v59, %v1450_v0 }
 0x21f   : > { %v1533_v53 = vmul.f32 1.442695, %v1519_v1 }
 0x220   : > { %vm1492_vm0 = vcmp.ge.f32.partialorder %v2732_v2, 0.0  ;;  %v1506_v3 = vsub.f32 0.0, %v2732_v2 }
 0x221   : > { %2246 = vpow2.f32 %v1533_v53  ;;  %v1452_v4 = vpop.xlane.xlu1 %1451 }
 0x222   : > { %v1520_v45 = vsel %vm1492_vm0, %v1506_v3, %v2732_v2  ;;  %v2740_v5 = vadd.f32 %v2721_v59, %v1452_v4 }
 0x223   : > { %v1535_v6 = vmul.f32 1.442695, %v1520_v45 }
 0x224   : > { %vm1493_vm1 = vcmp.ge.f32.partialorder %v2740_v5, 0.0  ;;  %v1507_v7 = vsub.f32 0.0, %v2740_v5 }
 0x225   : > { %2248 = vpow2.f32 %v1535_v6  ;;  %v1454_v9 = vpop.xlane.xlu1 %1453 }
 0x226   : > { %v1521_v10 = vsel %vm1493_vm1, %v1507_v7, %v2740_v5  ;;  %v2748_v12 = vadd.f32 %v2721_v59, %v1454_v9 }
 0x227   : > { %v1537_v14 = vmul.f32 1.442695, %v1521_v10 }
 0x228   : > { %vm1494_vm2 = vcmp.ge.f32.partialorder %v2748_v12, 0.0  ;;  %v1508_v15 = vsub.f32 0.0, %v2748_v12 }
 0x229   : > { %2250 = vpow2.f32 %v1537_v14  ;;  %v1456_v17 = vpop.xlane.xlu0 %1455 }
 0x22a   : > { %v1522_v18 = vsel %vm1494_vm2, %v1508_v15, %v2748_v12  ;;  %v2758_v8 = vadd.f32 %v2721_v59, %v1456_v17 }
 0x22b   : > { %v2247_v19 = vpop.eup %2246  ;;  %v1539_v20 = vmul.f32 1.442695, %v1522_v18  ;;  %v1458_v58 = vpop.xlane.xlu1 %1457 }
 0x22c   : > { %v1575_v21 = vadd.f32 1.0, %v2247_v19  ;;  %vm1495_vm3 = vcmp.ge.f32.partialorder %v2758_v8, 0.0  ;;  %v1509_v22 = vsub.f32 0.0, %v2758_v8  ;;  %v2763_v11 = vadd.f32 %v2721_v59, %v1458_v58 }
 0x22d   : > { %2252 = vpow2.f32 %v1539_v20  ;;  %v1561_v46 = vsel %vm1491_vm15, 1.0, %v2247_v19 }
 0x22e   : > { %2254 = vrcp.f32 %v1575_v21  ;;  %v1523_v23 = vsel %vm1495_vm3, %v1509_v22, %v2758_v8  ;;  %vm1496_vm4 = vcmp.ge.f32.partialorder %v2763_v11, 0.0  ;;  %v1510_v26 = vsub.f32 0.0, %v2763_v11 }
 0x22f   : > { %v2249_v25 = vpop.eup %2248  ;;  %v1541_v62 = vmul.f32 1.442695, %v1523_v23 }
 0x230   : > { %v1576_v28 = vadd.f32 1.0, %v2249_v25  ;;  %v1524_v29 = vsel %vm1496_vm4, %v1510_v26, %v2763_v11  ;;  %v1562_v54 = vsel %vm1492_vm0, 1.0, %v2249_v25 }
 0x231   : > { %2256 = vpow2.f32 %v1541_v62  ;;  %v1460_v30 = vpop.xlane.xlu0 %1459  ;;  %v1543_v32 = vmul.f32 1.442695, %v1524_v29 }
 0x232   : > { %2258 = vrcp.f32 %v1576_v28  ;;  %v2774_v33 = vadd.f32 %v2721_v59, %v1460_v30 }
 0x233   : > { %v2251_v35 = vpop.eup %2250  ;;  %v1462_v36 = vpop.xlane.xlu1 %1461  ;;  %2260 = vpow2.f32 %v1543_v32 }
 0x234   : > { %v1577_v37 = vadd.f32 1.0, %v2251_v35  ;;  %vm1497_vm5 = vcmp.ge.f32.partialorder %v2774_v33, 0.0  ;;  %v1511_v39 = vsub.f32 0.0, %v2774_v33  ;;  %v2779_v40 = vadd.f32 %v2721_v59, %v1462_v36 }
 0x235   : > { %v1563_v41 = vsel %vm1493_vm1, 1.0, %v2251_v35 }
 0x236   : > { %2262 = vrcp.f32 %v1577_v37  ;;  %v1525_v24 = vsel %vm1497_vm5, %v1511_v39, %v2774_v33  ;;  %vm1498_vm6 = vcmp.ge.f32.partialorder %v2779_v40, 0.0  ;;  %v1512_v13 = vsub.f32 0.0, %v2779_v40 }
 0x237   : > { %v2253_v42 = vpop.eup %2252  ;;  %v1545_v48 = vmul.f32 1.442695, %v1525_v24 }
 0x238   : > { %v2255_v43 = vpop.eup %2254  ;;  %v1578_v47 = vadd.f32 1.0, %v2253_v42  ;;  %v1526_v16 = vsel %vm1498_vm6, %v1512_v13, %v2779_v40  ;;  %v1564_v7 = vsel %vm1494_vm2, 1.0, %v2253_v42 }
 0x239   : > { %v1590_v27 = vmul.f32 %v2255_v43, %v1561_v46  ;;  %v1464_v44 = vpop.xlane.xlu0 %1463  ;;  %v1547_v49 = vmul.f32 1.442695, %v1526_v16 }
 0x23a   : > { %2264 = vrcp.f32 %v1578_v47  ;;  %v2797_v50 = vadd.f32 %v2721_v59, %v1464_v44 }
 0x23b   : > { %v2257_v51 = vpop.eup %2256  ;;  %1618 = vst.msk [vmem:[%s2789_s16] sm:$0xff] %vm1617_vm7, %v1590_v27  ;;  %2266 = vpow2.f32 %v1545_v48  ;;  %v1466_v52 = vpop.xlane.xlu1 %1465 }
 0x23c   : > { %v2259_v38 = vpop.eup %2258  ;;  %v1579_v55 = vadd.f32 1.0, %v2257_v51  ;;  %2268 = vpow2.f32 %v1547_v49  ;;  %vm1499_vm8 = vcmp.ge.f32.partialorder %v2797_v50, 0.0  ;;  %v1513_v56 = vsub.f32 0.0, %v2797_v50 }
 0x23d   : > { %v1592_v57 = vmul.f32 %v2259_v38, %v1562_v54  ;;  %v2806_v60 = vadd.f32 %v2721_v59, %v1466_v52  ;;  %v2261_v31 = vpop.eup %2260  ;;  %v1565_v22 = vsel %vm1495_vm3, 1.0, %v2257_v51 }
 0x23e   : > { %2270 = vrcp.f32 %v1579_v55  ;;  %v1580_v61 = vadd.f32 1.0, %v2261_v31  ;;  %v1527_v63 = vsel %vm1499_vm8, %v1513_v56, %v2797_v50  ;;  %v1566_v8 = vsel %vm1496_vm4, 1.0, %v2261_v31 }
 0x23f   : > { %1619 = vst.msk [vmem:[%s2789_s16 + $0x8] sm:$0xff] %vm1617_vm7, %v1592_v57  ;;  %vm1500_vm9 = vcmp.ge.f32.partialorder %v2806_v60, 0.0  ;;  %v1549_v0 = vmul.f32 1.442695, %v1527_v63  ;;  %v1514_v1 = vsub.f32 0.0, %v2806_v60 }
 0x240   : > { %v2263_v34 = vpop.eup %2262  ;;  %2272 = vrcp.f32 %v1580_v61 }
 0x241   : > { %v1594_v2 = vmul.f32 %v2263_v34, %v1563_v41  ;;  %v1468_v53 = vpop.xlane.xlu0 %1467  ;;  %2274 = vpow2.f32 %v1549_v0  ;;  %v1528_v3 = vsel %vm1500_vm9, %v1514_v1, %v2806_v60 }
 0x242   : > { %v2821_v4 = vadd.f32 %v2721_v59, %v1468_v53  ;;  %v1551_v45 = vmul.f32 1.442695, %v1528_v3 }
 0x243   : > { %1620 = vst.msk [vmem:[%s2789_s16 + $0x10] sm:$0xff] %vm1617_vm7, %v1594_v2  ;;  %v1470_v5 = vpop.xlane.xlu1 %1469 }
 0x244   : > { %v2265_v6 = vpop.eup %2264  ;;  %vm1501_vm10 = vcmp.ge.f32.partialorder %v2821_v4, 0.0  ;;  %v1515_v9 = vsub.f32 0.0, %v2821_v4  ;;  %v2830_v10 = vadd.f32 %v2721_v59, %v1470_v5  ;;  %2276 = vpow2.f32 %v1551_v45 }
 0x245   : > { %v2267_v14 = vpop.eup %2266  ;;  %v1596_v15 = vmul.f32 %v2265_v6, %v1564_v7 }
 0x246   : > { %v2269_v17 = vpop.eup %2268  ;;  %v1581_v18 = vadd.f32 1.0, %v2267_v14  ;;  %v1529_v19 = vsel %vm1501_vm10, %v1515_v9, %v2821_v4  ;;  %vm1502_vm11 = vcmp.ge.f32.partialorder %v2830_v10, 0.0  ;;  %v1516_v58 = vsub.f32 0.0, %v2830_v10 }
 0x247   : > { %1621 = vst.msk [vmem:[%s2789_s16 + $0x18] sm:$0xff] %vm1617_vm7, %v1596_v15  ;;  %v1582_v12 = vadd.f32 1.0, %v2269_v17  ;;  %v1553_v20 = vmul.f32 1.442695, %v1529_v19  ;;  %v1568_v44 = vsel %vm1498_vm6, 1.0, %v2269_v17 }
 0x248   : > { %v2271_v21 = vpop.eup %2270  ;;  %2278 = vrcp.f32 %v1581_v18  ;;  %v1530_v25 = vsel %vm1502_vm11, %v1516_v58, %v2830_v10 }
 0x249   : > { %v1598_v23 = vmul.f32 %v2271_v21, %v1565_v22  ;;  %2280 = vrcp.f32 %v1582_v12  ;;  %v1472_v62 = vpop.xlane.xlu0 %1471  ;;  %v1555_v26 = vmul.f32 1.442695, %v1530_v25 }
 0x24a   : > { %2282 = vpow2.f32 %v1553_v20  ;;  %v2845_v28 = vadd.f32 %v2721_v59, %v1472_v62  ;;  %v2273_v29 = vpop.eup %2272 }
 0x24b   : > { %1622 = vst.msk [vmem:[%s2789_s16 + $0x20] sm:$0xff] %vm1617_vm7, %v1598_v23  ;;  %v1474_v30 = vpop.xlane.xlu1 %1473  ;;  %v2275_v32 = vpop.eup %2274  ;;  %v1600_v35 = vmul.f32 %v2273_v29, %v1566_v8  ;;  %2284 = vpow2.f32 %v1555_v26 }
 0x24c   : > { %vm1503_vm12 = vcmp.ge.f32.partialorder %v2845_v28, 0.0  ;;  %v1517_v36 = vsub.f32 0.0, %v2845_v28  ;;  %v1583_v37 = vadd.f32 1.0, %v2275_v32  ;;  %v1490_v39 = vadd.f32 %v2721_v59, %v1474_v30 }
 0x24d   : > { %1623 = vst.msk [vmem:[%s2789_s16 + $0x28] sm:$0xff] %vm1617_vm7, %v1600_v35  ;;  %v1567_v59 = vsel %vm1497_vm5, 1.0, %v2267_v14  ;;  %v1569_v55 = vsel %vm1499_vm8, 1.0, %v2275_v32 }
 0x24e   : > { %v1531_v42 = vsel %vm1503_vm12, %v1517_v36, %v2845_v28  ;;  %v2277_v24 = vpop.eup %2276  ;;  %2286 = vrcp.f32 %v1583_v37  ;;  %vm1504_vm13 = vcmp.ge.f32.partialorder %v1490_v39, 0.0  ;;  %v1518_v13 = vsub.f32 0.0, %v1490_v39 }
 0x24f   : > { %v1557_v11 = vmul.f32 1.442695, %v1531_v42  ;;  %v1584_v43 = vadd.f32 1.0, %v2277_v24  ;;  %v1570_v31 = vsel %vm1500_vm9, 1.0, %v2277_v24 }
 0x250   : > { %v1532_v46 = vsel %vm1504_vm13, %v1518_v13, %v1490_v39 }
 0x251   : > { %2288 = vpow2.f32 %v1557_v11  ;;  %v1559_v48 = vmul.f32 1.442695, %v1532_v46 }
 0x252   : > { %v2279_v47 = vpop.eup %2278  ;;  %2290 = vrcp.f32 %v1584_v43 }
 0x253   : > { %v2281_v27 = vpop.eup %2280  ;;  %v1602_v16 = vmul.f32 %v2279_v47, %v1567_v59  ;;  %2292 = vpow2.f32 %v1559_v48 }
 0x254   : > { %v2283_v49 = vpop.eup %2282  ;;  %v1604_v51 = vmul.f32 %v2281_v27, %v1568_v44 }
 0x255   : > { %1624 = vst.msk [vmem:[%s2789_s16 + $0x30] sm:$0xff] %vm1617_vm7, %v1602_v16  ;;  %v1585_v52 = vadd.f32 1.0, %v2283_v49  ;;  %v2285_v38 = vpop.eup %2284  ;;  %v1571_v0 = vsel %vm1501_vm10, 1.0, %v2283_v49 }
 0x256   : > { %1625 = vst.msk [vmem:[%s2789_s16 + $0x38] sm:$0xff] %vm1617_vm7, %v1604_v51  ;;  %v1586_v33 = vadd.f32 1.0, %v2285_v38  ;;  %v1572_v60 = vsel %vm1502_vm11, 1.0, %v2285_v38 }
 0x257   : > { %2294 = vrcp.f32 %v1585_v52 }
 0x258   : > { %v2287_v54 = vpop.eup %2286  ;;  %2296 = vrcp.f32 %v1586_v33 }
 0x259   : > { %v1606_v40 = vmul.f32 %v2287_v54, %v1569_v55 }
 0x25b   : > { %v2289_v57 = vpop.eup %2288  ;;  %1626 = vst.msk [vmem:[%s2789_s16 + $0x40] sm:$0xff] %vm1617_vm7, %v1606_v40 }
 0x25c   : > { %v2291_v56 = vpop.eup %2290  ;;  %v1587_v61 = vadd.f32 1.0, %v2289_v57  ;;  %v1573_v45 = vsel %vm1503_vm12, 1.0, %v2289_v57 }
 0x25d   : > { %v1608_v63 = vmul.f32 %v2291_v56, %v1570_v31  ;;  %v2293_v34 = vpop.eup %2292 }
 0x25e   : > { %2298 = vrcp.f32 %v1587_v61  ;;  %v1588_v50 = vadd.f32 1.0, %v2293_v34  ;;  %v1574_v4 = vsel %vm1504_vm13, 1.0, %v2293_v34 }
 0x25f   : > { %1627 = vst.msk [vmem:[%s2789_s16 + $0x48] sm:$0xff] %vm1617_vm7, %v1608_v63 }
 0x260   : > { %2300 = vrcp.f32 %v1588_v50 }
 0x261   : > { %v2295_v41 = vpop.eup %2294 }
 0x262   : > { %v1610_v1 = vmul.f32 %v2295_v41, %v1571_v0  ;;  %v2297_v2 = vpop.eup %2296 }
 0x263   : > { %v1612_v53 = vmul.f32 %v2297_v2, %v1572_v60 }
 0x264   : > { %1628 = vst.msk [vmem:[%s2789_s16 + $0x50] sm:$0xff] %vm1617_vm7, %v1610_v1 }
 0x265   : > { %1629 = vst.msk [vmem:[%s2789_s16 + $0x58] sm:$0xff] %vm1617_vm7, %v1612_v53 }
 0x268   : > { %v2299_v3 = vpop.eup %2298 }
 0x269   : > { %v1614_v5 = vmul.f32 %v2299_v3, %v1573_v45 }
 0x26a   : > { %v2301_v6 = vpop.eup %2300 }
 0x26b   : > { %1630 = vst.msk [vmem:[%s2789_s16 + $0x60] sm:$0xff] %vm1617_vm7, %v1614_v5  ;;  %v1616_v7 = vmul.f32 %v2301_v6, %v1574_v4 }
 0x26d   : > { %1631 = vst.msk [vmem:[%s2789_s16 + $0x68] sm:$0xff] %vm1617_vm7, %v1616_v7 }
 0x26e PF: > { %s2922_s17 = smov %s2513_s20  ;;  %p17_p6 = scmp.ge.s32.totalorder %s2488_s30, 4  }
 0x26f   : > { %s2923_s20 = smov %s2390_s21  ;;  %s2924_s21 = smov %s2394_s22 }
 0x270   : > { %s2925_s22 = smov %s2922_s17  ;;  %s2926_s23 = smov %s2488_s30 }
 0x271   :  { %19 = sbr.rel (!%p17_p6) target bundleno = 6 (0x6), region = 84 }
 0x278   :  { %1654 = vsyncpa [#allocation4], 1 }
 0x279   :  { %1656 = vsyncpa [#allocation4 + $0x1], 1 }
 0x27a   :  { %1657 = vsyncpa [#allocation6], 1 }

</bundles_post_ra>
